<compile_context>
chip_gen: v7x
topology: tpu7x:2x2x1
jax: 0.10.0
libtpu: 0.0.40
codegen_flags: <defaults>
</compile_context>

<pallas_src>
import jax
import jax.numpy as jnp
from jax.experimental import pallas as pl
from jax.experimental.pallas import tpu as pltpu
from jax.scipy.linalg import lu as scipy_lu


# ----------------------------------------------------------------------------
# VMEM budget (generation-aware)
# ----------------------------------------------------------------------------
def _vmem_budget_bytes():
    """Per-generation VMEM budget used for tile sizing and vmem_limit_bytes."""
    cap = None
    try:
        cap = int(pltpu.get_tpu_info().vmem_capacity_bytes)
    except Exception:
        cap = None
    if not cap or cap <= 0:
        cap = 64 * 1024 * 1024  # conservative default (v7x per-core VMEM)
    # ~60% of physical, clamped: ~38 MiB on v7x (64 MiB), ~77 MiB on v5e/v6e (128 MiB).
    return int(min(max(cap * 0.6, 16 * 1024 * 1024), 80 * 1024 * 1024))


# ----------------------------------------------------------------------------
# Kernel 1: build the (S, S) mixing weight from the LU parameterization.
# ----------------------------------------------------------------------------
def _calc_weight_kernel(w_p_ref, w_l_ref, w_u_ref, log_s_ref, s_sign_ref, w_ref):
    S = w_p_ref.shape[0]
    row = jax.lax.broadcasted_iota(jnp.int32, (S, S), 0)
    col = jax.lax.broadcasted_iota(jnp.int32, (S, S), 1)
    strict_lower = row > col          # l_mask
    strict_upper = row < col          # u_mask
    eye = row == col                  # l_eye / diag selector

    # L = w_l * l_mask + I     (unit lower triangular)
    l_mat = jnp.where(strict_lower, w_l_ref[...], 0.0) + eye.astype(jnp.float32)

    # U = w_u * u_mask + diag(s_sign * exp(w_s))
    diag_vals = s_sign_ref[...] * jnp.exp(log_s_ref[...])          # (1, S)
    u_mat = jnp.where(strict_upper, w_u_ref[...], 0.0) + jnp.where(eye, diag_vals, 0.0)

    lu_mat = jnp.dot(l_mat, u_mat, preferred_element_type=jnp.float32)
    w_ref[...] = jnp.dot(w_p_ref[...], lu_mat, preferred_element_type=jnp.float32)


def calc_weight(params, *, vmem_limit_bytes):
    S = params["w_p"].shape[0]

    def full2(shape):
        return pl.BlockSpec(shape, lambda i: (0, 0))

    return pl.pallas_call(
        _calc_weight_kernel,
        out_shape=jax.ShapeDtypeStruct((S, S), jnp.float32),
        grid=(1,),
        in_specs=[
            full2((S, S)),   # w_p
            full2((S, S)),   # w_l
            full2((S, S)),   # w_u
            full2((1, S)),   # log|s|
            full2((1, S)),   # sign(s)
        ],
        out_specs=full2((S, S)),
        compiler_params=pltpu.CompilerParams(
            dimension_semantics=("arbitrary",),
            vmem_limit_bytes=vmem_limit_bytes,
        ),
    )(params["w_p"], params["w_l"], params["w_u"],
      params["log_s"], params["s_sign"])


# ----------------------------------------------------------------------------
# Kernel 2: apply the weight along the sequence axis:  out[b] = W @ x[b]
# ----------------------------------------------------------------------------
def _apply_kernel(w_ref, x_ref, o_ref):
    # w_ref: (S, S) already in x dtype, grid-invariant (stays resident in VMEM).
    # x_ref/o_ref: (S, TC) -- batch dim squeezed by the BlockSpec.
    # One MXU dot per grid step (N = TC lane-dense), f32 accumulation, one
    # large unmasked store.
    o_ref[...] = jnp.dot(
        w_ref[...], x_ref[...], preferred_element_type=jnp.float32
    ).astype(o_ref.dtype)


def _pick_channel_tile(C_pad, S, B, x_itemsize, w_itemsize, budget_bytes):
    """Largest multiple-of-128 channel tile that divides C_pad and fits the
    full per-step VMEM working set; keeps >= 2 grid steps when possible."""
    weight_bytes = 2 * S * S * w_itemsize              # worst case: double-buffered

    def fits(tc):
        io_tiles = 2 * (S * tc * x_itemsize) * 2       # x + out tiles, double-buffered
        acc = S * tc * 4                               # f32 matmul result before cast
        return weight_bytes + io_tiles + acc <= budget_bytes

    candidates = [d for d in range(128, C_pad + 1, 128) if C_pad % d == 0]
    tc = 128
    for cand in sorted(candidates, reverse=True):
        if fits(cand):
            tc = cand
            break

    # v7x has 2 TensorCores: keep the (parallel) grid at >= 2 steps when the
    # batch axis alone can't provide them.
    if B == 1 and C_pad >= 256:
        tc = min(tc, max(128, ((C_pad // 2) // 128) * 128))
        while C_pad % tc != 0:
            tc -= 128
    return max(tc, 128)


def _run_apply(weight, x, TC, vmem_limit_bytes, *, single_buffer_weight):
    B, S, C = x.shape
    grid = (B, C // TC)

    x_spec = pl.BlockSpec((None, S, TC), lambda b, c: (b, 0, c))
    o_spec = pl.BlockSpec((None, S, TC), lambda b, c: (b, 0, c))
    if single_buffer_weight:
        # Constant block index -> never re-fetched; single buffer halves its
        # resident VMEM footprint.
        w_spec = pl.BlockSpec((S, S), lambda b, c: (0, 0),
                              pipeline_mode=pl.Buffered(1))
    else:
        w_spec = pl.BlockSpec((S, S), lambda b, c: (0, 0))

    cost = pl.CostEstimate(
        flops=2 * B * S * S * C,
        transcendentals=0,
        bytes_accessed=(2 * x.size * x.dtype.itemsize
                        + weight.size * weight.dtype.itemsize),
    )

    return pl.pallas_call(
        _apply_kernel,
        out_shape=jax.ShapeDtypeStruct((B, S, C), x.dtype),
        grid=grid,
        in_specs=[w_spec, x_spec],
        out_specs=o_spec,
        compiler_params=pltpu.CompilerParams(
            dimension_semantics=("parallel", "parallel"),
            vmem_limit_bytes=vmem_limit_bytes,
        ),
        cost_estimate=cost,
    )(weight, x)


def invconv1d_lu_forward(x, params):
    """x: [B, S, C] with S == in_seq.  Returns the seq-mixed output, same shape."""
    B, S, C = x.shape
    assert params["w_p"].shape == (S, S)

    budget = _vmem_budget_bytes()

    # Build W on-chip once, then pre-cast it to x.dtype in the wrapper so the
    # apply kernel never re-emits a cast and the MXU sees native operands.
    # (bf16 inputs => bf16 weight; accumulation stays f32.)
    weight = calc_weight(params, vmem_limit_bytes=budget).astype(x.dtype)

    # Lane-dense channel axis: pad to a multiple of 128 so stores are unmasked.
    C_pad = ((C + 127) // 128) * 128
    x_p = x if C_pad == C else jnp.pad(x, ((0, 0), (0, 0), (0, C_pad - C)))

    TC = _pick_channel_tile(C_pad, S, B, x.dtype.itemsize,
                            weight.dtype.itemsize, budget)

    try:
        out = _run_apply(weight, x_p, TC, budget, single_buffer_weight=True)
    except Exception:
        # Fallback for jax builds without BlockSpec(pipeline_mode=...) support:
        # identical kernel, default double-buffered (still grid-invariant) weight.
        out = _run_apply(weight, x_p, TC, budget, single_buffer_weight=False)

    return out if C_pad == C else out[:, :, :C]


# ----------------------------------------------------------------------------
# Plain-JAX reference + parameter init (mirrors InvConv1dLU.__init__)
# ----------------------------------------------------------------------------
def invconv1d_lu_reference(x, params):
    S = params["w_p"].shape[0]
    eye = jnp.eye(S, dtype=jnp.float32)
    l_mask = jnp.tril(jnp.ones((S, S), jnp.float32), -1)
    u_mask = jnp.triu(jnp.ones((S, S), jnp.float32), 1)
    l_mat = params["w_l"] * l_mask + eye
    u_mat = params["w_u"] * u_mask + jnp.diag(
        (params["s_sign"] * jnp.exp(params["log_s"]))[0])
    w = params["w_p"] @ l_mat @ u_mat
    return jnp.einsum("ts,bsc->btc", w, x)


def init_params(key, in_seq):
    """Random orthogonal matrix -> P, L, U (+ log|s|, sign(s)), as in the module."""
    w0 = jax.random.normal(key, (in_seq, in_seq), jnp.float32)
    q, _ = jnp.linalg.qr(w0)
    p, l, u = scipy_lu(q)
    s = jnp.diagonal(u)
    return {
        "w_p": p.astype(jnp.float32),
        "w_l": l.astype(jnp.float32),
        "w_u": jnp.triu(u, 1).astype(jnp.float32),
        "log_s": jnp.log(jnp.abs(s)).reshape(1, in_seq).astype(jnp.float32),
        "s_sign": jnp.sign(s).reshape(1, in_seq).astype(jnp.float32),
    }


if __name__ == "__main__":
    # batch=2, in_seq=16, channels=128 (lane-dense last dim)
    B, S, C = 2, 16, 128

    key = jax.random.PRNGKey(0)
    k_x, k_p = jax.random.split(key)
    x = jax.random.normal(k_x, (B, S, C), jnp.float32)
    params = init_params(k_p, S)

    y = invconv1d_lu_forward(x, params)
    y = jax.block_until_ready(y)

    y_ref = invconv1d_lu_reference(x, params)
    assert y.shape == (B, S, C)
    assert jnp.allclose(y, y_ref, atol=2e-4, rtol=2e-4), "mismatch vs reference"

    print("KERNEL_OK")
</pallas_src>

<mosaic_0001>
module attributes {stable_mosaic.version = 11 : i64} {
  func.func @_calc_weight_kernel(%arg0: i32, %arg1: memref<16x16xf32, #tpu.memory_space<vmem>>, %arg2: memref<16x16xf32, #tpu.memory_space<vmem>>, %arg3: memref<16x16xf32, #tpu.memory_space<vmem>>, %arg4: memref<1x16xf32, #tpu.memory_space<vmem>>, %arg5: memref<1x16xf32, #tpu.memory_space<vmem>>, %arg6: memref<16x16xf32, #tpu.memory_space<vmem>>) attributes {dimension_semantics = [#tpu.dimension_semantics<arbitrary>], iteration_bounds = array<i64: 1>, scalar_prefetch = 0 : i64, scratch_operands = 0 : i64, tpu.core_type = #tpu.core_type<tc>, window_params = [{pipeline_mode = #tpu.pipeline_mode<synchronous>, transform_indices = @transform_0, window_bounds = array<i64: 16, 16>}, {pipeline_mode = #tpu.pipeline_mode<synchronous>, transform_indices = @transform_1, window_bounds = array<i64: 16, 16>}, {pipeline_mode = #tpu.pipeline_mode<synchronous>, transform_indices = @transform_2, window_bounds = array<i64: 16, 16>}, {pipeline_mode = #tpu.pipeline_mode<synchronous>, transform_indices = @transform_3, window_bounds = array<i64: 1, 16>}, {pipeline_mode = #tpu.pipeline_mode<synchronous>, transform_indices = @transform_4, window_bounds = array<i64: 1, 16>}, {pipeline_mode = #tpu.pipeline_mode<synchronous>, transform_indices = @transform_5, window_bounds = array<i64: 16, 16>}]} {
    %0 = tpu.iota {dimensions = array<i32: 0>} : vector<16x16xi32>
    %1 = tpu.iota {dimensions = array<i32: 1>} : vector<16x16xi32>
    %2 = arith.cmpi sgt, %0, %1 : vector<16x16xi32>
    %3 = arith.cmpi slt, %0, %1 : vector<16x16xi32>
    %4 = arith.cmpi eq, %0, %1 : vector<16x16xi32>
    %c0 = arith.constant 0 : index
    %c0_0 = arith.constant 0 : index
    %5 = vector.load %arg2[%c0, %c0_0] : memref<16x16xf32, #tpu.memory_space<vmem>>, vector<16x16xf32>
    %cst = arith.constant 0.000000e+00 : f32
    %6 = vector.broadcast %cst : f32 to vector<16x16xf32>
    %7 = arith.select %2, %5, %6 : vector<16x16xi1>, vector<16x16xf32>
    %8 = arith.extui %4 : vector<16x16xi1> to vector<16x16xi32>
    %9 = arith.sitofp %8 : vector<16x16xi32> to vector<16x16xf32>
    %10 = arith.addf %7, %9 : vector<16x16xf32>
    %c0_1 = arith.constant 0 : index
    %c0_2 = arith.constant 0 : index
    %11 = vector.load %arg5[%c0_1, %c0_2] : memref<1x16xf32, #tpu.memory_space<vmem>>, vector<1x16xf32>
    %c0_3 = arith.constant 0 : index
    %c0_4 = arith.constant 0 : index
    %12 = vector.load %arg4[%c0_3, %c0_4] : memref<1x16xf32, #tpu.memory_space<vmem>>, vector<1x16xf32>
    %13 = math.exp %12 : vector<1x16xf32>
    %14 = arith.mulf %11, %13 : vector<1x16xf32>
    %c0_5 = arith.constant 0 : index
    %c0_6 = arith.constant 0 : index
    %15 = vector.load %arg3[%c0_5, %c0_6] : memref<16x16xf32, #tpu.memory_space<vmem>>, vector<16x16xf32>
    %cst_7 = arith.constant 0.000000e+00 : f32
    %16 = vector.broadcast %cst_7 : f32 to vector<16x16xf32>
    %17 = arith.select %3, %15, %16 : vector<16x16xi1>, vector<16x16xf32>
    %cst_8 = arith.constant 0.000000e+00 : f32
    %18 = vector.shape_cast %14 : vector<1x16xf32> to vector<1x16xf32>
    %19 = vector.broadcast %18 : vector<1x16xf32> to vector<16x16xf32>
    %20 = vector.broadcast %cst_8 : f32 to vector<16x16xf32>
    %21 = arith.select %4, %19, %20 : vector<16x16xi1>, vector<16x16xf32>
    %22 = arith.addf %17, %21 : vector<16x16xf32>
    %cst_9 = arith.constant dense<0.000000e+00> : vector<16x16xf32>
    %23 = tpu.matmul %10, %22, %cst_9 {dimension_numbers = #tpu.dot_dimension_numbers<[1], [0], [0], [1], [0, 0, 1, 1], [], []>} : vector<16x16xf32>, vector<16x16xf32>, vector<16x16xf32> -> vector<16x16xf32>
    %c0_10 = arith.constant 0 : index
    %c0_11 = arith.constant 0 : index
    %24 = vector.load %arg1[%c0_10, %c0_11] : memref<16x16xf32, #tpu.memory_space<vmem>>, vector<16x16xf32>
    %cst_12 = arith.constant dense<0.000000e+00> : vector<16x16xf32>
    %25 = tpu.matmul %24, %23, %cst_12 {dimension_numbers = #tpu.dot_dimension_numbers<[1], [0], [0], [1], [0, 0, 1, 1], [], []>} : vector<16x16xf32>, vector<16x16xf32>, vector<16x16xf32> -> vector<16x16xf32>
    %c0_13 = arith.constant 0 : index
    %c0_14 = arith.constant 0 : index
    %26 = vector.load %arg6[%c0_13, %c0_14] : memref<16x16xf32, #tpu.memory_space<vmem>>, vector<16x16xf32>
    tpu.vector_store %arg6[%c0_13, %c0_14], %25 {strides = array<i32>} : memref<16x16xf32, #tpu.memory_space<vmem>>, vector<16x16xf32>,
    return
  }
  func.func @transform_0(%arg0: i32) -> (i32, i32) {
    %c0_i32 = arith.constant 0 : i32
    %c0_i32_0 = arith.constant 0 : i32
    %c0_i32_1 = arith.constant 0 : i32
    return %c0_i32, %c0_i32_0 : i32, i32
  }
  func.func @transform_1(%arg0: i32) -> (i32, i32) {
    %c0_i32 = arith.constant 0 : i32
    %c0_i32_0 = arith.constant 0 : i32
    %c0_i32_1 = arith.constant 0 : i32
    return %c0_i32, %c0_i32_0 : i32, i32
  }
  func.func @transform_2(%arg0: i32) -> (i32, i32) {
    %c0_i32 = arith.constant 0 : i32
    %c0_i32_0 = arith.constant 0 : i32
    %c0_i32_1 = arith.constant 0 : i32
    return %c0_i32, %c0_i32_0 : i32, i32
  }
  func.func @transform_3(%arg0: i32) -> (i32, i32) {
    %c0_i32 = arith.constant 0 : i32
    %c0_i32_0 = arith.constant 0 : i32
    %c0_i32_1 = arith.constant 0 : i32
    return %c0_i32, %c0_i32_0 : i32, i32
  }
  func.func @transform_4(%arg0: i32) -> (i32, i32) {
    %c0_i32 = arith.constant 0 : i32
    %c0_i32_0 = arith.constant 0 : i32
    %c0_i32_1 = arith.constant 0 : i32
    return %c0_i32, %c0_i32_0 : i32, i32
  }
  func.func @transform_5(%arg0: i32) -> (i32, i32) {
    %c0_i32 = arith.constant 0 : i32
    %c0_i32_0 = arith.constant 0 : i32
    %c0_i32_1 = arith.constant 0 : i32
    return %c0_i32, %c0_i32_0 : i32, i32
  }
}

</mosaic_0001>

<bundles_post_ra>
// kernel: tpu_custom_call.1
= control target key start
LH: loop header
LB: loop body
LE: loop exit
PB: predicated region body
PF: predicated region fallthrough
CT: control target
= control target key end

     0   :  { %10 = vsyncpa [#allocation3], 0  ;;  %s544_s0 = inlined_call_operand.hbm [shape: f32[16,16], index: 0, kind: input, shape index: {}]   ;;  %s545_s1 = inlined_call_operand.hbm [shape: f32[16,16], index: 1, kind: input, shape index: {}]   ;;  %s546_s2 = inlined_call_operand.hbm [shape: f32[16,16], index: 2, kind: input, shape index: {}]   ;;  %s547_s3 = inlined_call_operand.vmem [shape: f32[1,16], index: 3, kind: input, shape index: {}]   ;;  %s548_s4 = inlined_call_operand.vmem [shape: f32[1,16], index: 4, kind: input, shape index: {}]   ;;  %s549_s5 = inlined_call_operand.hbm [shape: f32[16,16], index: 5, kind: output, shape index: {}]  }
   0x1   :  { %11 = vsyncpa [#allocation6], 0 }
   0x2   :  { %12 = vsyncpa [#allocation4], 0  ;;  %s426_s18 = smov [#allocation5]   ;;  %s427_s20 = smov [#allocation2]  }
   0x3   :  { %s30_s19 = sshll.u32 %s426_s18, 4  ;;  %s18_s21 = sshll.u32 %s427_s20, 4  ;;  %s31_s19 = int_to_ptr.vmem [resolvable:$true] %s30_s19  ;;  %s463_s21 = int_to_ptr.vmem [resolvable:$true] %s18_s21 }
   0x4   :  { %s332_s24 = scalar_lea.hbm %s545_s1, 256 }
   0x5   :  { %p333_p0 = scmp.ne.s32.totalorder %s545_s1, %s332_s24  ;;  %p336_p1 = scmp.lt.u32.totalorder %s332_s24, %s545_s1 }
   0x7   :  { %p338_p2 = pnand %p336_p1, %p333_p0 }
   0x9   :  { %341 = shalt.err (!%p338_p2)
}
   0xa   :  { %s342_s29 = scalar_lea.vmem %s31_s19, 256  ;;  %p347_p4 = scmp.lt.s32.totalorder %s31_s19, %s31_s19 }
   0xb   :  { %p343_p3 = scmp.ne.s32.totalorder %s31_s19, %s342_s29  ;;  %p348_p5 = scmp.lt.s32.totalorder %s342_s29, %s342_s29 }
   0xd   :  { %p349_p6 = por %p348_p5, %p347_p4 }
   0xf   :  { %p350_p7 = pnand %p349_p6, %p343_p3 }
  0x11   :  { %353 = shalt.err (!%p350_p7)
}
  0x12   :  { %s428_s30 = smov 128   ;;  %s429_s6 = smov 8  }
  0x13   :  { %36 = dma.hbm_to_vmem [thread:$0]  %s545_s1, 256, %s31_s19, [#allocation6], %s428_s30, %s428_s30, %s429_s6  }
  0x14   :  { %s354_s11 = scalar_lea.hbm %s544_s0, 256 }
  0x15   :  { %p355_p8 = scmp.ne.s32.totalorder %s544_s0, %s354_s11  ;;  %p358_p9 = scmp.lt.u32.totalorder %s354_s11, %s544_s0 }
  0x17   :  { %p360_p10 = pnand %p358_p9, %p355_p8 }
  0x19   :  { %363 = shalt.err (!%p360_p10)
}
  0x1a   :  { %s364_s16 = scalar_lea.vmem %s463_s21, 256  ;;  %p369_p12 = scmp.lt.s32.totalorder %s463_s21, %s463_s21 }
  0x1b   :  { %p365_p11 = scmp.ne.s32.totalorder %s463_s21, %s364_s16  ;;  %p370_p13 = scmp.lt.s32.totalorder %s364_s16, %s364_s16 }
  0x1d   :  { %p371_p0 = por %p370_p13, %p369_p12 }
  0x1f   :  { %p372_p1 = pnand %p371_p0, %p365_p11 }
  0x21   :  { %375 = shalt.err (!%p372_p1)
}
  0x22   :  { %24 = dma.hbm_to_vmem [thread:$0]  %s544_s0, 256, %s463_s21, [#allocation3], %s428_s30, %s428_s30, %s429_s6  }
  0x23   :  { %s430_s18 = smov [#allocation7]   ;;  %s376_s23 = scalar_lea.hbm %s546_s2, 256 }
  0x24   :  { %s42_s19 = sshll.u32 %s430_s18, 4  ;;  %p377_p2 = scmp.ne.s32.totalorder %s546_s2, %s376_s23  ;;  %s43_s19 = int_to_ptr.vmem [resolvable:$true] %s42_s19 }
  0x25   :  { %p380_p3 = scmp.lt.u32.totalorder %s376_s23, %s546_s2 }
  0x27   :  { %p382_p4 = pnand %p380_p3, %p377_p2 }
  0x29   :  { %385 = shalt.err (!%p382_p4)
}
  0x2a   :  { %s386_s28 = scalar_lea.vmem %s43_s19, 256  ;;  %p391_p6 = scmp.lt.s32.totalorder %s43_s19, %s43_s19 }
  0x2b   :  { %p387_p5 = scmp.ne.s32.totalorder %s43_s19, %s386_s28  ;;  %p392_p7 = scmp.lt.s32.totalorder %s386_s28, %s386_s28 }
  0x2d   :  { %p393_p8 = por %p392_p7, %p391_p6 }
  0x2f   :  { %p394_p9 = pnand %p393_p8, %p387_p5 }
  0x31   :  { %397 = shalt.err (!%p394_p9)
}
  0x32   :  { %48 = dma.hbm_to_vmem [thread:$0]  %s546_s2, 256, %s43_s19, [#allocation6], %s428_s30, %s428_s30, %s429_s6  }
  0x33   :  { %420 = dma.done.wait [#allocation3], 256  }
  0x34   :  { %421 = vsyncadd [#allocation3], 4294967040 }
  0x35   :  { %422 = dma.done.wait [#allocation6], 512  }
  0x36   :  { %423 = vsyncadd [#allocation6], 4294966784  ;;  %v62_v0 = vlaneseq  ;;  %v84_v3 = vld [vmem:[%s547_s3] sm:$0x1]  ;;  %v431_v4 = vmov 0.0   ;;  %v73_v7 = vld [vmem:[#allocation5] sm:$0xff] }
  0x37   :  { %v85_v6 = vmul.f32 1.442695, %v84_v3  ;;  %vm102_vm2 = vcmask 130048   ;;  %v83_v11 = vld [vmem:[%s548_s4] sm:$0x1]  ;;  %v89_v15 = vld [vmem:[#allocation7 + $0x8] sm:$0xff] }
  0x38   :  { %v66_v1 = vand.u32 127, %v62_v0  ;;  %v63_v2 = vshrl.u32 %v62_v0, 7  ;;  %v88_v14 = vld [vmem:[#allocation7] sm:$0xff]  ;;  %v74_v20 = vld [vmem:[#allocation5 + $0x8] sm:$0xff]  ;;  %v185_v33 = vld [vmem:[#allocation2 + $0x8] sm:$0xff]  ;;  %s432_s3 = smov [#allocation8]  }
  0x39   :  { %330 = vpow2.f32 %v85_v6  ;;  %v184_v29 = vld [vmem:[#allocation2] sm:$0xff]  ;;  %s274_s4 = sshll.u32 %s432_s3, 4  ;;  %s275_s4 = int_to_ptr.vmem [resolvable:$true] %s274_s4 }
  0x3a   :  { %vm71_vm0 = vcmp.eq.s32.totalorder %v63_v2, %v66_v1  ;;  %vm67_vm1 = vcmp.gt.s32.totalorder %v63_v2, %v66_v1  ;;  %v64_v10 = vadd.s32 8, %v63_v2  ;;  %v95_v12 = vsub.s32 0, %v63_v2  ;;  %312 = vmatprep.mubr.msk.f32.mxu1 %vm102_vm2, %v184_v29  ;;  %s398_s9 = scalar_lea.vmem %s275_s4, 256  ;;  %p403_p11 = scmp.lt.s32.totalorder %s275_s4, %s275_s4 }
  0x3b   :  { %v287_v5 = vsel %vm71_vm0, 1.0, %v431_v4  ;;  %v75_v8 = vsel %vm67_vm1, %v73_v7, 0.0  ;;  %vm69_vm3 = vcmp.lt.s32.totalorder %v63_v2, %v66_v1  ;;  %p399_p10 = scmp.ne.s32.totalorder %s275_s4, %s398_s9  ;;  %p404_p12 = scmp.lt.s32.totalorder %s398_s9, %s398_s9 }
  0x3c   :  { %v81_v9 = vadd.f32 %v287_v5, %v75_v8  ;;  %vm70_vm4 = vcmp.lt.s32.totalorder %v64_v10, %v66_v1  ;;  %vm72_vm5 = vcmp.eq.s32.totalorder %v64_v10, %v66_v1  ;;  %v90_v17 = vsel %vm69_vm3, %v88_v14, 0.0 }
  0x3d   :  { %v91_v18 = vsel %vm70_vm4, %v89_v15, 0.0  ;;  %vm68_vm6 = vcmp.gt.s32.totalorder %v64_v10, %v66_v1  ;;  %v288_v26 = vsel %vm72_vm5, 1.0, %v431_v4  ;;  %p405_p13 = por %p404_p12, %p403_p11 }
  0x3e   :  { %305 = vmatprep.mubr.msk.f32.mxu0 %vm102_vm2, %v81_v9  ;;  %v76_v25 = vsel %vm68_vm6, %v74_v20, 0.0 }
  0x3f   :  { %v82_v28 = vadd.f32 %v288_v26, %v76_v25  ;;  %p406_p0 = pnand %p405_p13, %p399_p10 }
  0x43   :  { %v331_v13 = vpop.eup %330 }
  0x44   :  { %v87_v16 = vmul.f32 %v331_v13, %v83_v11 }
  0x46   :  { %v96_v19 = vrot.slane %v87_v16, %v95_v12 }
  0x48   :  { %v98_v21 = vsel %vm71_vm0, %v96_v19, 0.0  ;;  %v99_v22 = vsel %vm72_vm5, %v96_v19, 0.0 }
  0x49   :  { %v100_v23 = vadd.f32 %v98_v21, %v90_v17  ;;  %v101_v24 = vadd.f32 %v99_v22, %v91_v18 }
  0x4b   :  { %v315_v27 = vpack.c.bf16 %v101_v24, %v100_v23 }
  0x4d   :  { %316 = vmatprep.subr.bf16.mxu0 %v315_v27 }
  0x4e   :  { %318 = vmatpush3.bf16.msra.mxu0 %v315_v27 }
  0x51   :  { %306 = vmatmul.mubr.msk.f32.vlgmr.msra.gmra.mrb[0].mxu0 %vm102_vm2, %v82_v28 }
 0x124   :  { %v307_v30 = vpop.f32.mrb[0].mxu0 }
 0x125   :  { %v175_v31 = vpop.f32.mrb[1].mxu0 }
 0x126   :  { %v319_v32 = vpack.c.bf16 %v307_v30, %v175_v31 }
 0x128   :  { %320 = vmatprep.subr.bf16.mxu1 %v319_v32 }
 0x129   :  { %322 = vmatpush3.bf16.msra.mxu1 %v319_v32 }
 0x12c   :  { %313 = vmatmul.mubr.msk.f32.vlgmr.msra.gmra.mrb[0].mxu1 %vm102_vm2, %v185_v33 }
 0x1ff   :  { %v314_v34 = vpop.f32.mrb[0].mxu1 }
 0x200   :  { %268 = vst.msk [vmem:[#allocation8 + $0x8] sm:$0xff] %vm102_vm2, %v314_v34  ;;  %v258_v35 = vpop.f32.mrb[1].mxu1 }
 0x201   :  { %267 = vst.msk [vmem:[#allocation8] sm:$0xff] %vm102_vm2, %v258_v35 }
 0x202   :  { %409 = shalt.err (!%p406_p0)
}
 0x203   :  { %s410_s12 = scalar_lea.hbm %s549_s5, 256 }
 0x204   :  { %p411_p1 = scmp.ne.s32.totalorder %s549_s5, %s410_s12  ;;  %p414_p2 = scmp.lt.u32.totalorder %s410_s12, %s549_s5 }
 0x206   :  { %p416_p3 = pnand %p414_p2, %p411_p1 }
 0x208   :  { %419 = shalt.err (!%p416_p3)
}
 0x209   :  { %280 = dma.vmem_to_hbm [thread:$0]  %s275_s4, 256, %s549_s5, [#allocation4], %s428_s30, %s428_s30, %s429_s6  }
 0x20a   :  { %424 = dma.done.wait [#allocation4], 256  }
 0x20b   :  { %425 = vsyncadd [#allocation4], 4294967040 }
 0x20c   :  { %284 = vsyncpa [#allocation3], 1 }
 0x20d   :  { %285 = vsyncpa [#allocation6], 1 }
 0x20e   :  { %286 = vsyncpa [#allocation4], 1 }

</bundles_post_ra>
